<compile_context>
chip_gen: v5e
topology: v5e:2x2
jax: 0.10.0
libtpu: 0.0.40
codegen_flags: <defaults>
</compile_context>

<pallas_src>
import jax
import jax.numpy as jnp
from jax.experimental import pallas as pl
from jax.experimental.pallas import tpu as pltpu

_LANE = 128  # lane width (last-dim alignment for the unmasked output store)


def _round_up(n, m):
    return ((n + m - 1) // m) * m


def _encoder_kernel(x_ref, w_ref, b_ref, o_ref):
    # x_ref: (B, Cin)            -- unpadded activations
    # w_ref: (Cin, Cout_pad)     -- weight, only the lane (output) dim padded
    # b_ref: (1, Cout_pad)       -- bias row
    # o_ref: (B, Cout_pad)       -- lane-dense output slab (unmasked vst)
    y = jnp.dot(
        x_ref[...],
        w_ref[...],
        preferred_element_type=jnp.float32,
        precision=jax.lax.Precision.HIGHEST,  # exact f32 parity with reference
    )
    # Bias add on the VPU co-issues under the MXU/store; single-op epilogue.
    o_ref[...] = jnp.maximum(y + b_ref[...], 0.0).astype(o_ref.dtype)


def prepare_encoder_params(w_t, b):
    """One-time param prep: pad ONLY the output (lane) dim to 128.

    w_t : (Cin, Cout) f32   (transposed PyTorch nn.Linear weight)
    b   : (1, Cout)   f32
    Returns (w_pad (Cin, Cout_pad), b_pad (1, Cout_pad), cout).
    """
    cin, cout = w_t.shape
    cout_pad = _round_up(cout, _LANE)
    w_pad = jnp.zeros((cin, cout_pad), jnp.float32)
    w_pad = w_pad.at[:, :cout].set(w_t.astype(jnp.float32))
    b_pad = jnp.zeros((1, cout_pad), jnp.float32)
    b_pad = b_pad.at[:, :cout].set(b.reshape(1, -1).astype(jnp.float32))
    return w_pad, b_pad, cout


def encoder_forward(x, w_pad, b_pad, cout):
    """x: (B, Cin) f32 -> relu(x @ W^T + b): (B, Cout) f32."""
    B = x.shape[0]
    cout_pad = w_pad.shape[1]

    y_pad = pl.pallas_call(
        _encoder_kernel,
        out_shape=jax.ShapeDtypeStruct((B, cout_pad), jnp.float32),
        # Gridless call: full arrays, VMEM-resident, no pipeline machinery.
        in_specs=[
            pl.BlockSpec(memory_space=pltpu.MemorySpace.VMEM),  # x (unpadded)
            pl.BlockSpec(memory_space=pltpu.MemorySpace.VMEM),  # weight
            pl.BlockSpec(memory_space=pltpu.MemorySpace.VMEM),  # bias
        ],
        out_specs=pl.BlockSpec(memory_space=pltpu.MemorySpace.VMEM),
    )(x.astype(jnp.float32), w_pad, b_pad)

    # Consumers that accept the lane-dense (B, 128) slab can skip this slice.
    return y_pad[:, :cout]


def init_encoder_params(key, in_channel, out_channel=4, hidden_channel=32):
    """Deterministic param init mirroring Encoder.__init__/restart.

    Weights: xavier_uniform, biases: zeros.  Only fc participates in forward;
    fc1/fc2 are created for shape fidelity, exactly like the PyTorch module.
    """
    k_fc, k_fc1, k_fc2 = jax.random.split(key, 3)

    def xavier_uniform(k, fan_out, fan_in):
        limit = (6.0 / (fan_in + fan_out)) ** 0.5
        # PyTorch weight layout is (out, in); store transposed (in, out).
        w = jax.random.uniform(k, (fan_out, fan_in), jnp.float32, -limit, limit)
        return w.T

    params = {
        "fc_w_t": xavier_uniform(k_fc, out_channel, in_channel),  # (Cin, Cout)
        "fc_b": jnp.zeros((1, out_channel), jnp.float32),
        # Unused in forward (parity with the module definition):
        "fc1_w_t": xavier_uniform(k_fc1, hidden_channel, in_channel),
        "fc1_b": jnp.zeros((1, hidden_channel), jnp.float32),
        "fc2_w_t": xavier_uniform(k_fc2, out_channel, hidden_channel),
        "fc2_b": jnp.zeros((1, out_channel), jnp.float32),
    }
    return params


if __name__ == "__main__":
    key = jax.random.PRNGKey(0)
    k_params, k_x = jax.random.split(key)

    batch = 8
    in_channel = 32
    out_channel = 4
    hidden_channel = 32

    params = init_encoder_params(k_params, in_channel, out_channel, hidden_channel)
    x = jax.random.normal(k_x, (batch, in_channel), dtype=jnp.float32)

    # One-time weight/bias prep (lane-dense output padding only).
    w_pad, b_pad, cout = prepare_encoder_params(params["fc_w_t"], params["fc_b"])

    y = encoder_forward(x, w_pad, b_pad, cout)
    y = jax.block_until_ready(y)

    # Reference check in plain JAX (same semantics as torch: relu(x @ W^T + b)).
    y_ref = jnp.maximum(x @ params["fc_w_t"] + params["fc_b"], 0.0)
    assert y.shape == (batch, out_channel)
    assert jnp.allclose(y, y_ref, atol=1e-5, rtol=1e-5)

    print("KERNEL_OK")
</pallas_src>

<mosaic_0001>
module attributes {stable_mosaic.version = 11 : i64} {
  func.func @_encoder_kernel(%arg0: memref<8x32xf32, #tpu.memory_space<vmem>>, %arg1: memref<32x128xf32, #tpu.memory_space<vmem>>, %arg2: memref<1x128xf32, #tpu.memory_space<vmem>>, %arg3: memref<8x128xf32, #tpu.memory_space<vmem>>) attributes {dimension_semantics = [], scalar_prefetch = 0 : i64, scratch_operands = 0 : i64, tpu.core_type = #tpu.core_type<tc>} {
    %c0 = arith.constant 0 : index
    %c0_0 = arith.constant 0 : index
    %0 = vector.load %arg0[%c0, %c0_0] : memref<8x32xf32, #tpu.memory_space<vmem>>, vector<8x32xf32>
    %c0_1 = arith.constant 0 : index
    %c0_2 = arith.constant 0 : index
    %1 = vector.load %arg1[%c0_1, %c0_2] : memref<32x128xf32, #tpu.memory_space<vmem>>, vector<32x128xf32>
    %cst = arith.constant dense<0.000000e+00> : vector<8x128xf32>
    %2 = tpu.matmul %0, %1, %cst {dimension_numbers = #tpu.dot_dimension_numbers<[1], [0], [0], [1], [0, 0, 1, 1], [], []>, precision = #tpu.contract_precision<fp32>} : vector<8x32xf32>, vector<32x128xf32>, vector<8x128xf32> -> vector<8x128xf32>
    %c0_3 = arith.constant 0 : index
    %c0_4 = arith.constant 0 : index
    %3 = vector.load %arg2[%c0_3, %c0_4] : memref<1x128xf32, #tpu.memory_space<vmem>>, vector<1x128xf32>
    %4 = vector.broadcast %3 : vector<1x128xf32> to vector<8x128xf32>
    %5 = arith.addf %2, %4 : vector<8x128xf32>
    %cst_5 = arith.constant 0.000000e+00 : f32
    %6 = vector.broadcast %cst_5 : f32 to vector<8x128xf32>
    %7 = arith.maximumf %5, %6 : vector<8x128xf32>
    %c0_6 = arith.constant 0 : index
    %c0_7 = arith.constant 0 : index
    %8 = vector.load %arg3[%c0_6, %c0_7] : memref<8x128xf32, #tpu.memory_space<vmem>>, vector<8x128xf32>
    tpu.vector_store %arg3[%c0_6, %c0_7], %7 {strides = array<i32>} : memref<8x128xf32, #tpu.memory_space<vmem>>, vector<8x128xf32>,
    return
  }
}

</mosaic_0001>

<bundles_post_ra>
// kernel: tpu_custom_call.1
= control target key start
LH: loop header
LB: loop body
LE: loop exit
PB: predicated region body
PF: predicated region fallthrough
CT: control target
= control target key end

     0   :  { %8 = vsyncpa [#allocation3], 0  ;;  %s384_s0 = inlined_call_operand.hbm [shape: f32[8,32], index: 0, kind: input, shape index: {}]   ;;  %s385_s1 = inlined_call_operand.hbm [shape: f32[32,128], index: 1, kind: input, shape index: {}]   ;;  %s386_s2 = inlined_call_operand.vmem [shape: f32[1,128], index: 2, kind: input, shape index: {}]   ;;  %s387_s3 = inlined_call_operand.hbm [shape: f32[8,128], index: 3, kind: output, shape index: {}]  }
   0x1   :  { %9 = vsyncpa [#allocation6], 0 }
   0x2   :  { %10 = vsyncpa [#allocation4], 0  ;;  %s16_s14 = sshll.u32 %s384_s0, 4  ;;  %s347_s15 = smov [#allocation2]   ;;  %s17_s14 = int_to_ptr.hbm [resolvable:$true] %s16_s14 }
   0x3   :  { %s18_s16 = sshll.u32 %s347_s15, 4  ;;  %s26_s19 = sshll.u32 %s385_s1, 4  ;;  %s19_s16 = int_to_ptr.vmem [resolvable:$true] %s18_s16  ;;  %s27_s19 = int_to_ptr.hbm [resolvable:$true] %s26_s19 }
   0x4   :  { %21 = dma.hbm_to_vmem [thread:$0]  %s17_s14, 128, %s19_s16, [#allocation3]  }
   0x5   :  { %s348_s20 = smov [#allocation5]   ;;  %s349_s22 = smov 128  }
   0x6   :  { %s28_s21 = sshll.u32 %s348_s20, 4  ;;  %s350_s23 = smov 8   ;;  %s29_s21 = int_to_ptr.vmem [resolvable:$true] %s28_s21 }
   0x7   :  { %34 = dma.hbm_to_vmem [thread:$0]  %s27_s19, 512, %s29_s21, [#allocation6], %s349_s22, %s349_s22, %s350_s23  }
   0x8   :  { %341 = dma.done.wait [#allocation3], 128  }
   0x9   :  { %342 = vsyncadd [#allocation3], 4294967168 }
   0xa   :  { %343 = dma.done.wait [#allocation6], 512  }
   0xb   :  { %344 = vsyncadd [#allocation6], 4294966784  ;;  %vm54_vm0 = vcmask 261120   ;;  %v49_v0 = vld [vmem:[#allocation5 + $0x18] sm:$0xff]  ;;  %v48_v1 = vld [vmem:[#allocation5 + $0x10] sm:$0xff]  ;;  %s351_s24 = smov [#allocation7]  }
   0xc   :  { %v47_v2 = vld [vmem:[#allocation5 + $0x8] sm:$0xff]  ;;  %v70_v3 = vand.u32 4294901760, %v49_v0  ;;  %v72_v4 = vand.u32 4294901760, %v48_v1  ;;  %v46_v6 = vld [vmem:[#allocation5] sm:$0xff]  ;;  %v45_v7 = vld [vmem:[#allocation2] sm:$0xff]  ;;  %s250_s25 = sshll.u32 %s351_s24, 4  ;;  %s251_s25 = int_to_ptr.vmem [resolvable:$true] %s250_s25 }
   0xd   :  { %v74_v5 = vand.u32 4294901760, %v47_v2  ;;  %v76_v8 = vand.u32 4294901760, %v46_v6  ;;  %v56_v9 = vsel %vm54_vm0, %v45_v7, 0  ;;  %v268_v31 = vld [vmem:[%s386_s2] ss:$0 sm:$0xff]  ;;  %s252_s28 = sshll.u32 %s387_s3, 4  ;;  %s253_s28 = int_to_ptr.hbm [resolvable:$true] %s252_s28 }
   0xe   :  { %v100_v10 = vsub.f32 %v49_v0, %v70_v3  ;;  %71 = vmatpush.msra.mxu0 %v70_v3  ;;  %v106_v11 = vsub.f32 %v48_v1, %v72_v4  ;;  %171 = vmatpush.msra.mxu3 %v70_v3  ;;  %v78_v13 = vand.u32 4294901760, %v56_v9 }
   0xf   :  { %v112_v12 = vsub.f32 %v47_v2, %v74_v5  ;;  %v118_v14 = vsub.f32 %v46_v6, %v76_v8 }
  0x10   :  { %142 = vmatpush.msra.mxu2 %v100_v10  ;;  %73 = vmatpush.msra.mxu0 %v72_v4  ;;  %v101_v15 = vand.u32 4294901760, %v100_v10  ;;  %v107_v16 = vand.u32 4294901760, %v106_v11  ;;  %v79_v17 = vsub.f32 %v56_v9, %v78_v13 }
  0x11   :  { %v113_v18 = vand.u32 4294901760, %v112_v12  ;;  %173 = vmatpush.msra.mxu3 %v72_v4  ;;  %v119_v19 = vand.u32 4294901760, %v118_v14 }
  0x12   :  { %145 = vmatpush.msra.mxu2 %v106_v11  ;;  %v102_v20 = vsub.f32 %v100_v10, %v101_v15  ;;  %75 = vmatpush.msra.mxu0 %v74_v5  ;;  %v108_v21 = vsub.f32 %v106_v11, %v107_v16  ;;  %v80_v23 = vand.u32 4294901760, %v79_v17 }
  0x13   :  { %v114_v22 = vsub.f32 %v112_v12, %v113_v18  ;;  %175 = vmatpush.msra.mxu3 %v74_v5  ;;  %v120_v27 = vsub.f32 %v118_v14, %v119_v19 }
  0x14   :  { %v103_v24 = vand.u32 4294901760, %v102_v20  ;;  %148 = vmatpush.msra.mxu2 %v112_v12  ;;  %v109_v25 = vand.u32 4294901760, %v108_v21  ;;  %77 = vmatpush.msra.mxu0 %v76_v8  ;;  %v81_v26 = vsub.f32 %v79_v17, %v80_v23 }
  0x15   :  { %177 = vmatpush.msra.mxu3 %v76_v8  ;;  %v115_v28 = vand.u32 4294901760, %v114_v22  ;;  %v121_v30 = vand.u32 4294901760, %v120_v27 }
  0x16   :  { %200 = vmatpush.msrb.mxu0 %v101_v15  ;;  %104 = vmatpush.msra.mxu1 %v103_v24  ;;  %v82_v29 = vand.u32 4294901760, %v81_v26 }
  0x17   :  { %151 = vmatpush.msra.mxu2 %v118_v14  ;;  %181 = vmatmul.f32.vlgmr.msra.gmra.mxu3 %v80_v23 }
  0x18   :  { %154 = vmatmul.f32.vlgmr.msra.gmra.mxu2 %v79_v17  ;;  %110 = vmatpush.msra.mxu1 %v109_v25 }
  0x19   :  { %83 = vmatmul.f32.vlgmr.msra.gmra.mxu0 %v82_v29 }
  0x1a   :  { %204 = vmatpush.msrb.mxu0 %v107_v16  ;;  %116 = vmatpush.msra.mxu1 %v115_v28 }
  0x1c   :  { %208 = vmatpush.msrb.mxu0 %v113_v18  ;;  %122 = vmatpush.msra.mxu1 %v121_v30 }
  0x1d   :  { %124 = vmatmul.f32.vlgmr.msra.gmra.mxu1 %v78_v13 }
  0x1e   :  { %212 = vmatpush.msrb.mxu0 %v119_v19  ;;  %231 = vmatpush.msrb.mxu1 %v70_v3 }
  0x20   :  { %233 = vmatpush.msrb.mxu1 %v72_v4 }
  0x21   :  { %214 = vmatmul.f32.vlgmr.msrb.gmra.mxu0 %v78_v13 }
  0x22   :  { %235 = vmatpush.msrb.mxu1 %v74_v5 }
  0x24   :  { %237 = vmatpush.msrb.mxu1 %v76_v8 }
  0x25   :  { %239 = vmatmul.f32.vlgmr.msrb.gmra.mxu1 %v78_v13 }
  0x96   :  { %v84_v32 = vpop.f32.mrf.mxu0 }
  0x97   :  { %v85_v33 = vadd.f32 %v268_v31, %v84_v32 }
  0x9a   :  { %v125_v34 = vpop.f32.mrf.mxu1  ;;  %v182_v37 = vpop.f32.mrf.mxu3 }
  0x9b   :  { %v155_v35 = vpop.f32.mrf.mxu2  ;;  %v126_v36 = vadd.f32 %v125_v34, %v85_v33 }
  0x9d   :  { %v156_v38 = vadd.f32 %v155_v35, %v126_v36 }
  0x9e   :  { %v215_v39 = vpop.f32.mrf.mxu0 }
  0x9f   :  { %v183_v40 = vadd.f32 %v182_v37, %v156_v38 }
  0xa1   :  { %v216_v41 = vadd.f32 %v215_v39, %v183_v40 }
  0xa2   :  { %v240_v42 = vpop.f32.mrf.mxu1 }
  0xa3   :  { %v241_v43 = vadd.f32 %v240_v42, %v216_v41 }
  0xa5   :  { %v243_v44 = vmax.f32 %v241_v43, 0.0 }
  0xa7   :  { %244 = vst [vmem:[#allocation7] sm:$0xff] %v243_v44 }
  0xa8   :  { %255 = dma.vmem_to_hbm [thread:$0]  %s251_s25, 128, %s253_s28, [#allocation4]  }
  0xa9   :  { %345 = dma.done.wait [#allocation4], 128  }
  0xaa   :  { %346 = vsyncadd [#allocation4], 4294967168 }
  0xab   :  { %260 = vsyncpa [#allocation3], 1 }
  0xac   :  { %261 = vsyncpa [#allocation6], 1 }
  0xad   :  { %262 = vsyncpa [#allocation4], 1 }

</bundles_post_ra>
